<compile_context>
chip_gen: v7x
topology: tpu7x:2x2x1
jax: 0.10.0
libtpu: 0.0.40
codegen_flags: <defaults>
</compile_context>

<pallas_src>
import functools

import jax
import jax.numpy as jnp
from jax.experimental import pallas as pl
from jax.experimental.pallas import tpu as pltpu


def _round_up(x, m):
    return ((x + m - 1) // m) * m


# ----------------------------------------------------------------------------
# Fused kernel: whole batch, whole model, one invocation.
# ----------------------------------------------------------------------------
def _fused_kernel(mel_ref, frames_ref, bias_attn_ref, w_ref,
                  emb_ref, sem_ref, *,
                  B, T, Tn, F3P, KP, DP,
                  o_w1, o_w2, o_wf, o_wp, o_wq, o_wk, o_wv, o_wo, o_b):
    # --- unpack the packed weight slab (static, 8-aligned slices) ---
    w1 = w_ref[o_w1:o_w1 + F3P, :]          # [F3P, DP] conv-as-im2col weight
    w2 = w_ref[o_w2:o_w2 + DP, :]           # [DP, DP]
    wf = w_ref[o_wf:o_wf + KP, :]           # [KP, DP]
    wp = w_ref[o_wp:o_wp + DP, :]
    wq = w_ref[o_wq:o_wq + DP, :]           # 1/sqrt(D) already folded in
    wk = w_ref[o_wk:o_wk + DP, :]
    wv = w_ref[o_wv:o_wv + DP, :]
    wo = w_ref[o_wo:o_wo + DP, :]
    bias = w_ref[o_b:o_b + 8, :]            # rows: b1, b2, bf, bp, 0...
    b1 = bias[0:1, :]
    b2 = bias[1:2, :]
    bf = bias[2:3, :]
    bp = bias[3:4, :]

    # ---------------- Timbre encoder ----------------
    # conv1d(F->D, k=3, pad=1) as a single im2col matmul, then pointwise linear.
    x = mel_ref[...]                                                  # [B*T, F3P]
    h1 = jnp.dot(x, w1, preferred_element_type=jnp.float32) + b1
    h1 = jnp.maximum(h1, 0.0)
    tok = jnp.dot(h1, w2, preferred_element_type=jnp.float32) + b2
    tok = jnp.maximum(tok, 0.0)                                       # [B*T, DP]

    # Global speaker embedding: per-batch mean over time (static unroll over B).
    embs = [jnp.mean(tok[b * T:(b + 1) * T, :], axis=0, keepdims=True)
            for b in range(B)]
    emb_ref[...] = jnp.concatenate(embs, axis=0)                      # [B, DP]

    # ---------------- Semantic encoder ----------------
    fr = frames_ref[...]                                              # [B*Tn, KP]
    h = jnp.dot(fr, wf, preferred_element_type=jnp.float32) + bf
    h = jax.nn.gelu(h, approximate=True)   # TODO(synk): PyTorch nn.GELU default is exact erf
    h = jnp.dot(h, wp, preferred_element_type=jnp.float32) + bp
    h = jax.nn.gelu(h, approximate=True)                              # [B*Tn, DP]

    q = jnp.dot(h, wq, preferred_element_type=jnp.float32)            # [B*Tn, DP]
    k = jnp.dot(tok, wk, preferred_element_type=jnp.float32)          # [B*T,  DP]
    v = jnp.dot(tok, wv, preferred_element_type=jnp.float32)          # [B*T,  DP]

    # Cross-attention over the whole flattened batch with a block-diagonal bias
    # (queries of batch b only attend to timbre tokens of batch b).
    s = jnp.dot(q, k.T, preferred_element_type=jnp.float32)           # [B*Tn, B*T]
    s = s + bias_attn_ref[...]
    s = s - jnp.max(s, axis=-1, keepdims=True)
    p = jnp.exp(s)
    p = p * pl.reciprocal(jnp.sum(p, axis=-1, keepdims=True), approx=True)
    ctx = jnp.dot(p, v, preferred_element_type=jnp.float32)           # [B*Tn, DP]

    sem_ref[...] = h + jnp.dot(ctx, wo, preferred_element_type=jnp.float32)


# ----------------------------------------------------------------------------
# Weight packing: pad everything to a lane-dense [rows, 128] slab (zero-padded
# columns/rows keep the math exact) and record static row offsets.
# ----------------------------------------------------------------------------
def _pack_weights(params, F3, D, F3P, KP, DP):
    t, s = params["timbre"], params["semantic"]

    def pad2(w, rows):
        return jnp.pad(w.astype(jnp.float32),
                       ((0, rows - w.shape[0]), (0, DP - w.shape[1])))

    w1 = pad2(t["w1"].reshape(F3, D), F3P)                  # tap-major im2col order
    w2 = pad2(t["w2"], DP)
    wf = pad2(s["wf"], KP)
    wp = pad2(s["wp"], DP)
    wq = pad2(s["wq"] / jnp.sqrt(jnp.float32(D)), DP)       # fold attention scale
    wk = pad2(s["wk"], DP)
    wv = pad2(s["wv"], DP)
    wo = pad2(s["wo"], DP)
    bias = jnp.zeros((8, DP), jnp.float32)
    bias = bias.at[0, :D].set(t["b1"][0])
    bias = bias.at[1, :D].set(t["b2"][0])
    bias = bias.at[2, :D].set(s["bf"][0])
    bias = bias.at[3, :D].set(s["bp"][0])

    blocks = [w1, w2, wf, wp, wq, wk, wv, wo, bias]
    names = ["o_w1", "o_w2", "o_wf", "o_wp", "o_wq", "o_wk", "o_wv", "o_wo", "o_b"]
    offs, r = {}, 0
    for n, blk in zip(names, blocks):
        offs[n] = r
        r += blk.shape[0]
    return jnp.concatenate(blocks, axis=0), offs


# ----------------------------------------------------------------------------
# Top-level forward (mirrors SpeechModel.forward).
# ----------------------------------------------------------------------------
def speech_model_forward(mel_spectrogram, waveform, params):
    """mel: [B,F,T], waveform: [B,1,Twav] -> (global_speaker_emb [B,D], semantic_repr [B,T',D])"""
    B, F, T = mel_spectrogram.shape
    D = params["timbre"]["w2"].shape[1]
    K = params["semantic"]["wf"].shape[0]
    DP = 128
    F3 = 3 * F
    F3P = _round_up(F3, 128)
    KP = _round_up(K, 128)

    # im2col for the k=3 / pad=1 conv over time, batch flattened into M.
    x = jnp.transpose(mel_spectrogram, (0, 2, 1))               # [B, T, F]
    xp = jnp.pad(x, ((0, 0), (1, 1), (0, 0)))                   # [B, T+2, F]
    x_cat = jnp.concatenate([xp[:, 0:T], xp[:, 1:T + 1], xp[:, 2:T + 2]], axis=-1)
    mel_cat = jnp.pad(x_cat.reshape(B * T, F3), ((0, 0), (0, F3P - F3)))

    # Non-overlapping waveform frames (trailing remainder dropped), batch flattened.
    Twav = waveform.shape[-1]
    Tn = Twav // K
    frames = waveform[:, 0, :Tn * K].reshape(B * Tn, K)
    frames = jnp.pad(frames, ((0, 0), (0, KP - K)))             # [B*Tn, KP]

    # Block-diagonal attention bias: query batch must match key batch.
    qb = jnp.repeat(jnp.arange(B), Tn)
    kb = jnp.repeat(jnp.arange(B), T)
    attn_bias = jnp.where(qb[:, None] == kb[None, :], 0.0, -1e30).astype(jnp.float32)

    wslab, offs = _pack_weights(params, F3, D, F3P, KP, DP)

    kernel = functools.partial(_fused_kernel, B=B, T=T, Tn=Tn,
                               F3P=F3P, KP=KP, DP=DP, **offs)

    emb_p, sem_p = pl.pallas_call(
        kernel,
        grid=(1,),
        in_specs=[
            pl.BlockSpec((B * T, F3P), lambda i: (0, 0)),
            pl.BlockSpec((B * Tn, KP), lambda i: (0, 0)),
            pl.BlockSpec((B * Tn, B * T), lambda i: (0, 0)),
            pl.BlockSpec(wslab.shape, lambda i: (0, 0)),
        ],
        out_specs=[
            pl.BlockSpec((B, DP), lambda i: (0, 0)),
            pl.BlockSpec((B * Tn, DP), lambda i: (0, 0)),
        ],
        out_shape=[
            jax.ShapeDtypeStruct((B, DP), jnp.float32),
            jax.ShapeDtypeStruct((B * Tn, DP), jnp.float32),
        ],
        compiler_params=pltpu.CompilerParams(dimension_semantics=("arbitrary",)),
    )(mel_cat, frames, attn_bias, wslab)

    global_speaker_emb = emb_p[:, :D]                            # [B, D]
    semantic_repr = sem_p[:, :D].reshape(B, Tn, D)               # [B, T', D]
    return global_speaker_emb, semantic_repr


def init_params(key, mel_dim=80, d_model=32, frame_kernel=16):
    ks = jax.random.split(key, 10)
    s = 0.05
    timbre = {
        "w1": s * jax.random.normal(ks[0], (3, mel_dim, d_model), jnp.float32),
        "b1": jnp.zeros((1, d_model), jnp.float32),
        "w2": s * jax.random.normal(ks[1], (d_model, d_model), jnp.float32),
        "b2": jnp.zeros((1, d_model), jnp.float32),
    }
    semantic = {
        "wf": s * jax.random.normal(ks[2], (frame_kernel, d_model), jnp.float32),
        "bf": jnp.zeros((1, d_model), jnp.float32),
        "wp": s * jax.random.normal(ks[3], (d_model, d_model), jnp.float32),
        "bp": jnp.zeros((1, d_model), jnp.float32),
        "wq": s * jax.random.normal(ks[4], (d_model, d_model), jnp.float32),
        "wk": s * jax.random.normal(ks[5], (d_model, d_model), jnp.float32),
        "wv": s * jax.random.normal(ks[6], (d_model, d_model), jnp.float32),
        "wo": s * jax.random.normal(ks[7], (d_model, d_model), jnp.float32),
    }
    return {"timbre": timbre, "semantic": semantic}


if __name__ == "__main__":
    # TODO(synk): TimbreEncoder/SemanticEncoder sources were not provided; the
    # architecture above is a representative stand-in with matching interfaces.
    B, F, T = 2, 80, 16          # mel: [B, F, T]
    T_wav = 128                  # waveform: [B, 1, T_wav]
    D, K = 32, 16                # d_model, frame kernel/stride (T' = 8)

    key = jax.random.PRNGKey(0)
    k_mel, k_wav, k_par = jax.random.split(key, 3)
    mel = jax.random.normal(k_mel, (B, F, T), jnp.float32)
    wav = jax.random.normal(k_wav, (B, 1, T_wav), jnp.float32)
    params = init_params(k_par, mel_dim=F, d_model=D, frame_kernel=K)

    fwd = jax.jit(speech_model_forward)
    global_emb, semantic_repr = fwd(mel, wav, params)
    jax.block_until_ready((global_emb, semantic_repr))

    assert global_emb.shape == (B, D)
    assert semantic_repr.shape == (B, T_wav // K, D)
    print("KERNEL_OK")
</pallas_src>

<mosaic_0001>
module attributes {stable_mosaic.version = 11 : i64} {
  func.func @_fused_kernel(%arg0: i32, %arg1: memref<32x256xf32, #tpu.memory_space<vmem>>, %arg2: memref<16x128xf32, #tpu.memory_space<vmem>>, %arg3: memref<16x32xf32, #tpu.memory_space<vmem>>, %arg4: memref<1160x128xf32, #tpu.memory_space<vmem>>, %arg5: memref<2x128xf32, #tpu.memory_space<vmem>>, %arg6: memref<16x128xf32, #tpu.memory_space<vmem>>) attributes {dimension_semantics = [#tpu.dimension_semantics<arbitrary>], iteration_bounds = array<i64: 1>, scalar_prefetch = 0 : i64, scratch_operands = 0 : i64, tpu.core_type = #tpu.core_type<tc>, window_params = [{pipeline_mode = #tpu.pipeline_mode<synchronous>, transform_indices = @transform_0, window_bounds = array<i64: 32, 256>}, {pipeline_mode = #tpu.pipeline_mode<synchronous>, transform_indices = @transform_1, window_bounds = array<i64: 16, 128>}, {pipeline_mode = #tpu.pipeline_mode<synchronous>, transform_indices = @transform_2, window_bounds = array<i64: 16, 32>}, {pipeline_mode = #tpu.pipeline_mode<synchronous>, transform_indices = @transform_3, window_bounds = array<i64: 1160, 128>}, {pipeline_mode = #tpu.pipeline_mode<synchronous>, transform_indices = @transform_4, window_bounds = array<i64: 2, 128>}, {pipeline_mode = #tpu.pipeline_mode<synchronous>, transform_indices = @transform_5, window_bounds = array<i64: 16, 128>}]} {
    %c0 = arith.constant 0 : index
    %c0_0 = arith.constant 0 : index
    %0 = vector.load %arg4[%c0, %c0_0] : memref<1160x128xf32, #tpu.memory_space<vmem>>, vector<256x128xf32>
    %c256 = arith.constant 256 : index
    %c0_1 = arith.constant 0 : index
    %1 = vector.load %arg4[%c256, %c0_1] : memref<1160x128xf32, #tpu.memory_space<vmem>>, vector<128x128xf32>
    %c384 = arith.constant 384 : index
    %c0_2 = arith.constant 0 : index
    %2 = vector.load %arg4[%c384, %c0_2] : memref<1160x128xf32, #tpu.memory_space<vmem>>, vector<128x128xf32>
    %c512 = arith.constant 512 : index
    %c0_3 = arith.constant 0 : index
    %3 = vector.load %arg4[%c512, %c0_3] : memref<1160x128xf32, #tpu.memory_space<vmem>>, vector<128x128xf32>
    %c640 = arith.constant 640 : index
    %c0_4 = arith.constant 0 : index
    %4 = vector.load %arg4[%c640, %c0_4] : memref<1160x128xf32, #tpu.memory_space<vmem>>, vector<128x128xf32>
    %c768 = arith.constant 768 : index
    %c0_5 = arith.constant 0 : index
    %5 = vector.load %arg4[%c768, %c0_5] : memref<1160x128xf32, #tpu.memory_space<vmem>>, vector<128x128xf32>
    %c896 = arith.constant 896 : index
    %c0_6 = arith.constant 0 : index
    %6 = vector.load %arg4[%c896, %c0_6] : memref<1160x128xf32, #tpu.memory_space<vmem>>, vector<128x128xf32>
    %c1024 = arith.constant 1024 : index
    %c0_7 = arith.constant 0 : index
    %7 = vector.load %arg4[%c1024, %c0_7] : memref<1160x128xf32, #tpu.memory_space<vmem>>, vector<128x128xf32>
    %c1152 = arith.constant 1152 : index
    %c0_8 = arith.constant 0 : index
    %8 = vector.load %arg4[%c1152, %c0_8] : memref<1160x128xf32, #tpu.memory_space<vmem>>, vector<8x128xf32>
    %9 = vector.extract_strided_slice %8 {offsets = [0, 0], sizes = [1, 128], strides = [1, 1]} : vector<8x128xf32> to vector<1x128xf32>
    %10 = vector.extract_strided_slice %8 {offsets = [1, 0], sizes = [1, 128], strides = [1, 1]} : vector<8x128xf32> to vector<1x128xf32>
    %11 = vector.extract_strided_slice %8 {offsets = [2, 0], sizes = [1, 128], strides = [1, 1]} : vector<8x128xf32> to vector<1x128xf32>
    %12 = vector.extract_strided_slice %8 {offsets = [3, 0], sizes = [1, 128], strides = [1, 1]} : vector<8x128xf32> to vector<1x128xf32>
    %c0_9 = arith.constant 0 : index
    %c0_10 = arith.constant 0 : index
    %13 = vector.load %arg1[%c0_9, %c0_10] : memref<32x256xf32, #tpu.memory_space<vmem>>, vector<32x256xf32>
    %cst = arith.constant dense<0.000000e+00> : vector<32x128xf32>
    %14 = tpu.matmul %13, %0, %cst {dimension_numbers = #tpu.dot_dimension_numbers<[1], [0], [0], [1], [0, 0, 1, 1], [], []>} : vector<32x256xf32>, vector<256x128xf32>, vector<32x128xf32> -> vector<32x128xf32>
    %15 = vector.broadcast %9 : vector<1x128xf32> to vector<32x128xf32>
    %16 = arith.addf %14, %15 : vector<32x128xf32>
    %cst_11 = arith.constant 0.000000e+00 : f32
    %17 = vector.broadcast %cst_11 : f32 to vector<32x128xf32>
    %18 = arith.maximumf %16, %17 : vector<32x128xf32>
    %cst_12 = arith.constant dense<0.000000e+00> : vector<32x128xf32>
    %19 = tpu.matmul %18, %1, %cst_12 {dimension_numbers = #tpu.dot_dimension_numbers<[1], [0], [0], [1], [0, 0, 1, 1], [], []>} : vector<32x128xf32>, vector<128x128xf32>, vector<32x128xf32> -> vector<32x128xf32>
    %20 = vector.broadcast %10 : vector<1x128xf32> to vector<32x128xf32>
    %21 = arith.addf %19, %20 : vector<32x128xf32>
    %cst_13 = arith.constant 0.000000e+00 : f32
    %22 = vector.broadcast %cst_13 : f32 to vector<32x128xf32>
    %23 = arith.maximumf %21, %22 : vector<32x128xf32>
    %24 = vector.extract_strided_slice %23 {offsets = [0, 0], sizes = [16, 128], strides = [1, 1]} : vector<32x128xf32> to vector<16x128xf32>
    %cst_14 = arith.constant dense<0.000000e+00> : vector<128xf32>
    %25 = vector.multi_reduction <add>, %24, %cst_14 [0] : vector<16x128xf32> to vector<128xf32>
    %26 = vector.shape_cast %25 : vector<128xf32> to vector<1x128xf32>
    %cst_15 = arith.constant 1.600000e+01 : f32
    %27 = vector.broadcast %cst_15 : f32 to vector<1x128xf32>
    %28 = arith.divf %26, %27 : vector<1x128xf32>
    %29 = vector.extract_strided_slice %23 {offsets = [16, 0], sizes = [16, 128], strides = [1, 1]} : vector<32x128xf32> to vector<16x128xf32>
    %cst_16 = arith.constant dense<0.000000e+00> : vector<128xf32>
    %30 = vector.multi_reduction <add>, %29, %cst_16 [0] : vector<16x128xf32> to vector<128xf32>
    %31 = vector.shape_cast %30 : vector<128xf32> to vector<1x128xf32>
    %cst_17 = arith.constant 1.600000e+01 : f32
    %32 = vector.broadcast %cst_17 : f32 to vector<1x128xf32>
    %33 = arith.divf %31, %32 : vector<1x128xf32>
    %34 = tpu.concatenate %28, %33 in 0 : vector<1x128xf32>, vector<1x128xf32> -> vector<2x128xf32>
    %c0_18 = arith.constant 0 : index
    %c0_19 = arith.constant 0 : index
    %35 = vector.load %arg5[%c0_18, %c0_19] : memref<2x128xf32, #tpu.memory_space<vmem>>, vector<2x128xf32>
    tpu.vector_store %arg5[%c0_18, %c0_19], %34 {strides = array<i32>} : memref<2x128xf32, #tpu.memory_space<vmem>>, vector<2x128xf32>,
    %c0_20 = arith.constant 0 : index
    %c0_21 = arith.constant 0 : index
    %36 = vector.load %arg2[%c0_20, %c0_21] : memref<16x128xf32, #tpu.memory_space<vmem>>, vector<16x128xf32>
    %cst_22 = arith.constant dense<0.000000e+00> : vector<16x128xf32>
    %37 = tpu.matmul %36, %2, %cst_22 {dimension_numbers = #tpu.dot_dimension_numbers<[1], [0], [0], [1], [0, 0, 1, 1], [], []>} : vector<16x128xf32>, vector<128x128xf32>, vector<16x128xf32> -> vector<16x128xf32>
    %38 = vector.broadcast %11 : vector<1x128xf32> to vector<16x128xf32>
    %39 = arith.addf %37, %38 : vector<16x128xf32>
    %40 = arith.mulf %39, %39 : vector<16x128xf32>
    %41 = arith.mulf %39, %40 : vector<16x128xf32>
    %cst_23 = arith.constant 4.471500e-02 : f32
    %42 = vector.broadcast %cst_23 : f32 to vector<16x128xf32>
    %43 = arith.mulf %42, %41 : vector<16x128xf32>
    %44 = arith.addf %39, %43 : vector<16x128xf32>
    %cst_24 = arith.constant 0.797884583 : f32
    %45 = vector.broadcast %cst_24 : f32 to vector<16x128xf32>
    %46 = arith.mulf %45, %44 : vector<16x128xf32>
    %47 = math.tanh %46 : vector<16x128xf32>
    %cst_25 = arith.constant 1.000000e+00 : f32
    %48 = vector.broadcast %cst_25 : f32 to vector<16x128xf32>
    %49 = arith.addf %48, %47 : vector<16x128xf32>
    %cst_26 = arith.constant 5.000000e-01 : f32
    %50 = vector.broadcast %cst_26 : f32 to vector<16x128xf32>
    %51 = arith.mulf %50, %49 : vector<16x128xf32>
    %52 = arith.mulf %39, %51 : vector<16x128xf32>
    %cst_27 = arith.constant dense<0.000000e+00> : vector<16x128xf32>
    %53 = tpu.matmul %52, %3, %cst_27 {dimension_numbers = #tpu.dot_dimension_numbers<[1], [0], [0], [1], [0, 0, 1, 1], [], []>} : vector<16x128xf32>, vector<128x128xf32>, vector<16x128xf32> -> vector<16x128xf32>
    %54 = vector.broadcast %12 : vector<1x128xf32> to vector<16x128xf32>
    %55 = arith.addf %53, %54 : vector<16x128xf32>
    %56 = arith.mulf %55, %55 : vector<16x128xf32>
    %57 = arith.mulf %55, %56 : vector<16x128xf32>
    %cst_28 = arith.constant 4.471500e-02 : f32
    %58 = vector.broadcast %cst_28 : f32 to vector<16x128xf32>
    %59 = arith.mulf %58, %57 : vector<16x128xf32>
    %60 = arith.addf %55, %59 : vector<16x128xf32>
    %cst_29 = arith.constant 0.797884583 : f32
    %61 = vector.broadcast %cst_29 : f32 to vector<16x128xf32>
    %62 = arith.mulf %61, %60 : vector<16x128xf32>
    %63 = math.tanh %62 : vector<16x128xf32>
    %cst_30 = arith.constant 1.000000e+00 : f32
    %64 = vector.broadcast %cst_30 : f32 to vector<16x128xf32>
    %65 = arith.addf %64, %63 : vector<16x128xf32>
    %cst_31 = arith.constant 5.000000e-01 : f32
    %66 = vector.broadcast %cst_31 : f32 to vector<16x128xf32>
    %67 = arith.mulf %66, %65 : vector<16x128xf32>
    %68 = arith.mulf %55, %67 : vector<16x128xf32>
    %cst_32 = arith.constant dense<0.000000e+00> : vector<16x128xf32>
    %69 = tpu.matmul %68, %4, %cst_32 {dimension_numbers = #tpu.dot_dimension_numbers<[1], [0], [0], [1], [0, 0, 1, 1], [], []>} : vector<16x128xf32>, vector<128x128xf32>, vector<16x128xf32> -> vector<16x128xf32>
    %cst_33 = arith.constant dense<0.000000e+00> : vector<32x128xf32>
    %70 = tpu.matmul %23, %5, %cst_33 {dimension_numbers = #tpu.dot_dimension_numbers<[1], [0], [0], [1], [0, 0, 1, 1], [], []>} : vector<32x128xf32>, vector<128x128xf32>, vector<32x128xf32> -> vector<32x128xf32>
    %cst_34 = arith.constant dense<0.000000e+00> : vector<32x128xf32>
    %71 = tpu.matmul %23, %6, %cst_34 {dimension_numbers = #tpu.dot_dimension_numbers<[1], [0], [0], [1], [0, 0, 1, 1], [], []>} : vector<32x128xf32>, vector<128x128xf32>, vector<32x128xf32> -> vector<32x128xf32>
    %72 = tpu.transpose %70, [1, 0] : vector<32x128xf32> -> vector<128x32xf32>
    %cst_35 = arith.constant dense<0.000000e+00> : vector<16x32xf32>
    %73 = tpu.matmul %69, %72, %cst_35 {dimension_numbers = #tpu.dot_dimension_numbers<[1], [0], [0], [1], [0, 0, 1, 1], [], []>} : vector<16x128xf32>, vector<128x32xf32>, vector<16x32xf32> -> vector<16x32xf32>
    %c0_36 = arith.constant 0 : index
    %c0_37 = arith.constant 0 : index
    %74 = vector.load %arg3[%c0_36, %c0_37] : memref<16x32xf32, #tpu.memory_space<vmem>>, vector<16x32xf32>
    %75 = arith.addf %73, %74 : vector<16x32xf32>
    %cst_38 = arith.constant dense<0xFF800000> : vector<16xf32>
    %76 = vector.multi_reduction <maximumf>, %75, %cst_38 [1] : vector<16x32xf32> to vector<16xf32>
    %77 = vector.shape_cast %76 : vector<16xf32> to vector<16x1xf32>
    %78 = vector.broadcast %77 : vector<16x1xf32> to vector<16x32xf32>
    %79 = arith.subf %75, %78 : vector<16x32xf32>
    %80 = math.exp %79 : vector<16x32xf32>
    %cst_39 = arith.constant dense<0.000000e+00> : vector<16xf32>
    %81 = vector.multi_reduction <add>, %80, %cst_39 [1] : vector<16x32xf32> to vector<16xf32>
    %82 = vector.shape_cast %81 : vector<16xf32> to vector<16x1xf32>
    %83 = tpu.reciprocal %82 {approx = true} : vector<16x1xf32> -> vector<16x1xf32>
    %84 = vector.broadcast %83 : vector<16x1xf32> to vector<16x32xf32>
    %85 = arith.mulf %80, %84 : vector<16x32xf32>
    %cst_40 = arith.constant dense<0.000000e+00> : vector<16x128xf32>
    %86 = tpu.matmul %85, %71, %cst_40 {dimension_numbers = #tpu.dot_dimension_numbers<[1], [0], [0], [1], [0, 0, 1, 1], [], []>} : vector<16x32xf32>, vector<32x128xf32>, vector<16x128xf32> -> vector<16x128xf32>
    %cst_41 = arith.constant dense<0.000000e+00> : vector<16x128xf32>
    %87 = tpu.matmul %86, %7, %cst_41 {dimension_numbers = #tpu.dot_dimension_numbers<[1], [0], [0], [1], [0, 0, 1, 1], [], []>} : vector<16x128xf32>, vector<128x128xf32>, vector<16x128xf32> -> vector<16x128xf32>
    %88 = arith.addf %68, %87 : vector<16x128xf32>
    %c0_42 = arith.constant 0 : index
    %c0_43 = arith.constant 0 : index
    %89 = vector.load %arg6[%c0_42, %c0_43] : memref<16x128xf32, #tpu.memory_space<vmem>>, vector<16x128xf32>
    tpu.vector_store %arg6[%c0_42, %c0_43], %88 {strides = array<i32>} : memref<16x128xf32, #tpu.memory_space<vmem>>, vector<16x128xf32>,
    return
  }
  func.func @transform_0(%arg0: i32) -> (i32, i32) {
    %c0_i32 = arith.constant 0 : i32
    %c0_i32_0 = arith.constant 0 : i32
    %c0_i32_1 = arith.constant 0 : i32
    return %c0_i32, %c0_i32_0 : i32, i32
  }
  func.func @transform_1(%arg0: i32) -> (i32, i32) {
    %c0_i32 = arith.constant 0 : i32
    %c0_i32_0 = arith.constant 0 : i32
    %c0_i32_1 = arith.constant 0 : i32
    return %c0_i32, %c0_i32_0 : i32, i32
  }
  func.func @transform_2(%arg0: i32) -> (i32, i32) {
    %c0_i32 = arith.constant 0 : i32
    %c0_i32_0 = arith.constant 0 : i32
    %c0_i32_1 = arith.constant 0 : i32
    return %c0_i32, %c0_i32_0 : i32, i32
  }
  func.func @transform_3(%arg0: i32) -> (i32, i32) {
    %c0_i32 = arith.constant 0 : i32
    %c0_i32_0 = arith.constant 0 : i32
    %c0_i32_1 = arith.constant 0 : i32
    return %c0_i32, %c0_i32_0 : i32, i32
  }
  func.func @transform_4(%arg0: i32) -> (i32, i32) {
    %c0_i32 = arith.constant 0 : i32
    %c0_i32_0 = arith.constant 0 : i32
    %c0_i32_1 = arith.constant 0 : i32
    return %c0_i32, %c0_i32_0 : i32, i32
  }
  func.func @transform_5(%arg0: i32) -> (i32, i32) {
    %c0_i32 = arith.constant 0 : i32
    %c0_i32_0 = arith.constant 0 : i32
    %c0_i32_1 = arith.constant 0 : i32
    return %c0_i32, %c0_i32_0 : i32, i32
  }
}

</mosaic_0001>

<bundles_post_ra>
// kernel: squeeze.5
= control target key start
LH: loop header
LB: loop body
LE: loop exit
PB: predicated region body
PF: predicated region fallthrough
CT: control target
= control target key end

     0   :  { %s66_s8 = smov 80   ;;  %vm7_vm0 = vcmask 130048   ;;  %s67_s11 = smov 96   ;;  %s117_s0 = inlined_call_operand.vmem [shape: f32[2,128], index: 0, kind: input, shape index: {}]   ;;  %s118_s1 = inlined_call_operand.vmem [shape: f32[16,16], index: 1, kind: output, shape index: {}]  }
   0x1   :  { %v4_v0 = vld [vmem:[%s117_s0] sm:$0x3]  ;;  %s65_s0 = smov 112   ;;  %s68_s12 = smov 64  }
   0x2   :  { %5 = vst [vmem:[#allocation0] sm:$0x3] %v4_v0  ;;  %s69_s13 = smov 48   ;;  %s70_s14 = smov 32  }
   0x3   :  { %s71_s15 = smov 16  }
   0x9   :  { %v9_v1 = vld [vmem:[#allocation0] sm:$0x3]  }
   0xa   :  { %v21_v2 = vld [vmem:[#allocation0] sm:$0x3]   ;;  %10 = vrot.lane.b32.xlu0 %v9_v1, %s65_s0 }
   0xb   :  { %22 = vrot.lane.b32.xlu1 %v21_v2, %s66_s8  ;;  %v15_v3 = vld [vmem:[#allocation0] sm:$0x3]  }
   0xc   :  { %v27_v4 = vld [vmem:[#allocation0] sm:$0x3]  }
   0xd   :  { %v6_v5 = vld [vmem:[#allocation0] sm:$0x3]  }
   0xe   :  { %8 = vst.msk [vmem:[%s118_s1] ss:$8 sm:$0x3] %vm7_vm0, %v6_v5   ;;  %16 = vrot.lane.b32.xlu0 %v15_v3, %s67_s11  ;;  %v33_v6 = vld [vmem:[#allocation0] sm:$0x3]  }
   0xf   :  { %28 = vrot.lane.b32.xlu1 %v27_v4, %s68_s12  ;;  %v39_v7 = vld [vmem:[#allocation0] sm:$0x3]  }
  0x10   :  { %v45_v8 = vld [vmem:[#allocation0] sm:$0x3]  }
  0x12   :  { %34 = vrot.lane.b32.xlu0 %v33_v6, %s69_s13 }
  0x13   :  { %40 = vrot.lane.b32.xlu1 %v39_v7, %s70_s14 }
  0x16   :  { %46 = vrot.lane.b32.xlu0 %v45_v8, %s71_s15 }
  0x7c   :  { %v11_v9 = vpop.permute.xlu0 %10  }
  0x7d   :  { %v23_v10 = vpop.permute.xlu1 %22   ;;  %51 = vst.msk [vmem:[%s118_s1 + $0x1] ss:$8 sm:$0x3] %vm7_vm0, %v11_v9  }
  0x7e   :  { %53 = vst.msk [vmem:[%s118_s1 + $0x3] ss:$8 sm:$0x3] %vm7_vm0, %v23_v10  }
  0x80   :  { %v17_v11 = vpop.permute.xlu0 %16  }
  0x81   :  { %v29_v12 = vpop.permute.xlu1 %28   ;;  %52 = vst.msk [vmem:[%s118_s1 + $0x2] ss:$8 sm:$0x3] %vm7_vm0, %v17_v11  }
  0x82   :  { %54 = vst.msk [vmem:[%s118_s1 + $0x4] ss:$8 sm:$0x3] %vm7_vm0, %v29_v12  }
  0x84   :  { %v35_v13 = vpop.permute.xlu0 %34  }
  0x85   :  { %v41_v14 = vpop.permute.xlu1 %40   ;;  %55 = vst.msk [vmem:[%s118_s1 + $0x5] ss:$8 sm:$0x3] %vm7_vm0, %v35_v13  }
  0x86   :  { %56 = vst.msk [vmem:[%s118_s1 + $0x6] ss:$8 sm:$0x3] %vm7_vm0, %v41_v14  }
  0x88   :  { %v47_v15 = vpop.permute.xlu0 %46  }
  0x89   :  { %57 = vst.msk [vmem:[%s118_s1 + $0x7] ss:$8 sm:$0x3] %vm7_vm0, %v47_v15  }

// kernel: eq.11
= control target key start
LH: loop header
LB: loop body
LE: loop exit
PB: predicated region body
PF: predicated region fallthrough
CT: control target
= control target key end

     0   :  { %vm7_vm0 = vcmask 130048   ;;  %vm13_vm1 = vcmask 261248   ;;  %s39_s0 = inlined_call_operand.vmem [shape: s32[2,16], index: 0, kind: input, shape index: {}]   ;;  %s40_s1 = inlined_call_operand.vmem [shape: s32[32], index: 1, kind: output, shape index: {}]  }
   0x1   :  { %v4_v0 = vld [vmem:[%s39_s0] sm:$0x3]  ;;  %s22_s0 = smov 16  }
   0x2   :  { %5 = vst [vmem:[#allocation1] sm:$0x3] %v4_v0 }
   0x9   :  { %v10_v1 = vld [vmem:[#allocation1 + $0x1] sm:$0x1]   ;;  %v6_v2 = vld [vmem:[#allocation1] sm:$0x1]  }
   0xa   :  { %11 = vrot.lane.b32.xlu0 %v10_v1, %s22_s0  ;;  %8 = vst.msk [vmem:[#allocation0] sm:$0x1] %vm7_vm0, %v6_v2  }
  0x7c   :  { %v12_v3 = vpop.permute.xlu0 %11  }
  0x7d   :  { %14 = vst.msk [vmem:[#allocation0] sm:$0x1] %vm13_vm1, %v12_v3  }
  0x84   :  { %v18_v4 = vld [vmem:[#allocation0] sm:$0x1] }
  0x85   :  { %20 = vst [vmem:[%s40_s1] sm:$0x1] %v18_v4 }

// kernel: eq.8
= control target key start
LH: loop header
LB: loop body
LE: loop exit
PB: predicated region body
PF: predicated region fallthrough
CT: control target
= control target key end

     0   :  { %vm7_vm0 = vcmask 64512   ;;  %vm13_vm1 = vcmask 130112   ;;  %s39_s0 = inlined_call_operand.vmem [shape: s32[2,8], index: 0, kind: input, shape index: {}]   ;;  %s40_s1 = inlined_call_operand.vmem [shape: s32[16], index: 1, kind: output, shape index: {}]  }
   0x1   :  { %v4_v0 = vld [vmem:[%s39_s0] sm:$0x3]  ;;  %s22_s0 = smov 8  }
   0x2   :  { %5 = vst [vmem:[#allocation1] sm:$0x3] %v4_v0 }
   0x9   :  { %v10_v1 = vld [vmem:[#allocation1 + $0x1] sm:$0x1]   ;;  %v6_v2 = vld [vmem:[#allocation1] sm:$0x1]  }
   0xa   :  { %11 = vrot.lane.b32.xlu0 %v10_v1, %s22_s0  ;;  %8 = vst.msk [vmem:[#allocation0] sm:$0x1] %vm7_vm0, %v6_v2  }
  0x7c   :  { %v12_v3 = vpop.permute.xlu0 %11  }
  0x7d   :  { %14 = vst.msk [vmem:[#allocation0] sm:$0x1] %vm13_vm1, %v12_v3  }
  0x84   :  { %v18_v4 = vld [vmem:[#allocation0] sm:$0x1] }
  0x85   :  { %20 = vst [vmem:[%s40_s1] sm:$0x1] %v18_v4 }

// kernel: speech_model_forward.1
= control target key start
LH: loop header
LB: loop body
LE: loop exit
PB: predicated region body
PF: predicated region fallthrough
CT: control target
= control target key end

     0   :  { %s2447_s0 = inlined_call_operand.vmem [shape: f32[32,256], index: 0, kind: input, shape index: {}]   ;;  %s2448_s1 = inlined_call_operand.vmem [shape: f32[16,128], index: 1, kind: input, shape index: {}]   ;;  %s2449_s2 = inlined_call_operand.vmem [shape: f32[16,32], index: 2, kind: input, shape index: {}]   ;;  %s2450_s3 = inlined_call_operand.vmem [shape: f32[1160,128], index: 3, kind: input, shape index: {}]   ;;  %s2451_s4 = inlined_call_operand.hbm [shape: f32[2,128], index: 4, kind: output, shape index: {0}]   ;;  %s2452_s5 = inlined_call_operand.vmem [shape: f32[16,128], index: 5, kind: output, shape index: {1}]  }
   0x1   :  { %v36_v0 = vld [vmem:[%s2450_s3 + $0x80] sm:$0xff]  ;;  %v37_v1 = vld [vmem:[%s2450_s3 + $0x88] sm:$0xff]  ;;  %v38_v5 = vld [vmem:[%s2450_s3 + $0x90] sm:$0xff] }
   0x2   :  { %v20_v2 = vld [vmem:[%s2450_s3] sm:$0xff]  ;;  %v1564_v3 = vpack.c.bf16 %v37_v1, %v36_v0  ;;  %v21_v4 = vld [vmem:[%s2450_s3 + $0x8] sm:$0xff]  ;;  %v39_v6 = vld [vmem:[%s2450_s3 + $0x98] sm:$0xff] }
   0x3   :  { %v1566_v7 = vpack.c.bf16 %v21_v4, %v20_v2  ;;  %v1568_v8 = vpack.c.bf16 %v39_v6, %v38_v5  ;;  %v22_v9 = vld [vmem:[%s2450_s3 + $0x10] sm:$0xff]  ;;  %v23_v10 = vld [vmem:[%s2450_s3 + $0x18] sm:$0xff]  ;;  %v40_v11 = vld [vmem:[%s2450_s3 + $0xa0] sm:$0xff] }
   0x4   :  { %1565 = vmatprep.subr.bf16.mxu0 %v1564_v3  ;;  %v41_v12 = vld [vmem:[%s2450_s3 + $0xa8] sm:$0xff]  ;;  %v1570_v13 = vpack.c.bf16 %v23_v10, %v22_v9  ;;  %v24_v15 = vld [vmem:[%s2450_s3 + $0x20] sm:$0xff]  ;;  %v42_v17 = vld [vmem:[%s2450_s3 + $0xb0] sm:$0xff] }
   0x5   :  { %1567 = vmatpush3.bf16.msra.mxu0 %v1566_v7  ;;  %v1572_v14 = vpack.c.bf16 %v41_v12, %v40_v11  ;;  %v25_v16 = vld [vmem:[%s2450_s3 + $0x28] sm:$0xff]  ;;  %v43_v18 = vld [vmem:[%s2450_s3 + $0xb8] sm:$0xff]  ;;  %v26_v21 = vld [vmem:[%s2450_s3 + $0x30] sm:$0xff] }
   0x6   :  { %1569 = vmatprep.subr.bf16.mxu0 %v1568_v8  ;;  %v1574_v19 = vpack.c.bf16 %v25_v16, %v24_v15  ;;  %v1576_v20 = vpack.c.bf16 %v43_v18, %v42_v17  ;;  %v27_v22 = vld [vmem:[%s2450_s3 + $0x38] sm:$0xff]  ;;  %v44_v23 = vld [vmem:[%s2450_s3 + $0xc0] sm:$0xff]  ;;  %v45_v24 = vld [vmem:[%s2450_s3 + $0xc8] sm:$0xff] }
   0x7   :  { %v166_v25 = vld [vmem:[%s2447_s0 + $0x8] sm:$0xff]  ;;  %v1578_v26 = vpack.c.bf16 %v27_v22, %v26_v21  ;;  %v1580_v27 = vpack.c.bf16 %v45_v24, %v44_v23  ;;  %v28_v28 = vld [vmem:[%s2450_s3 + $0x40] sm:$0xff]  ;;  %v46_v30 = vld [vmem:[%s2450_s3 + $0xd0] sm:$0xff] }
   0x8   :  { %241 = vmatprep.mubr.f32.mxu0 %v166_v25  ;;  %v29_v29 = vld [vmem:[%s2450_s3 + $0x48] sm:$0xff]  ;;  %v47_v31 = vld [vmem:[%s2450_s3 + $0xd8] sm:$0xff]  ;;  %v30_v34 = vld [vmem:[%s2450_s3 + $0x50] sm:$0xff] }
   0x9   :  { %1571 = vmatpush3.bf16.msra.mxu0 %v1570_v13  ;;  %v1582_v32 = vpack.c.bf16 %v29_v29, %v28_v28  ;;  %v1584_v33 = vpack.c.bf16 %v47_v31, %v46_v30  ;;  %v31_v35 = vld [vmem:[%s2450_s3 + $0x58] sm:$0xff]  ;;  %v48_v36 = vld [vmem:[%s2450_s3 + $0xe0] sm:$0xff]  ;;  %v49_v37 = vld [vmem:[%s2450_s3 + $0xe8] sm:$0xff] }
   0xa   :  { %1573 = vmatprep.subr.bf16.mxu0 %v1572_v14  ;;  %v52_v38 = vld [vmem:[%s2450_s3 + $0x100] sm:$0xff]  ;;  %v53_v39 = vld [vmem:[%s2450_s3 + $0x108] sm:$0xff]  ;;  %v1586_v40 = vpack.c.bf16 %v31_v35, %v30_v34  ;;  %v54_v43 = vld [vmem:[%s2450_s3 + $0x110] sm:$0xff]  ;;  %v1588_v45 = vpack.c.bf16 %v49_v37, %v48_v36 }
   0xb   :  { %v32_v41 = vld [vmem:[%s2450_s3 + $0x60] sm:$0xff]  ;;  %v1596_v42 = vpack.c.bf16 %v53_v39, %v52_v38  ;;  %v55_v44 = vld [vmem:[%s2450_s3 + $0x118] sm:$0xff]  ;;  %v33_v46 = vld [vmem:[%s2450_s3 + $0x68] sm:$0xff] }
   0xc   :  { %v1600_v47 = vpack.c.bf16 %v55_v44, %v54_v43  ;;  %v56_v48 = vld [vmem:[%s2450_s3 + $0x120] sm:$0xff]  ;;  %v57_v49 = vld [vmem:[%s2450_s3 + $0x128] sm:$0xff]  ;;  %v50_v50 = vld [vmem:[%s2450_s3 + $0xf0] sm:$0xff] }
   0xd   :  { %1575 = vmatpush3.bf16.msra.mxu0 %v1574_v19  ;;  %v51_v51 = vld [vmem:[%s2450_s3 + $0xf8] sm:$0xff]  ;;  %1597 = vmatprep.subr.bf16.mxu1 %v1596_v42 }
   0xe   :  { %1577 = vmatprep.subr.bf16.mxu0 %v1576_v20 }
  0x11   :  { %1579 = vmatpush3.bf16.msra.mxu0 %v1578_v26 }
  0x12   :  { %1581 = vmatprep.subr.bf16.mxu0 %v1580_v27 }
  0x15   :  { %1583 = vmatpush3.bf16.msra.mxu0 %v1582_v32 }
  0x16   :  { %1585 = vmatprep.subr.bf16.mxu0 %v1584_v33 }
  0x17   :  { %11 = vsyncpa [#allocation3], 0  ;;  %1599 = vmatpush3.bf16.msra.mxu1 %v1596_v42  ;;  %v1590_v52 = vpack.c.bf16 %v33_v46, %v32_v41  ;;  %v34_v53 = vld [vmem:[%s2450_s3 + $0x70] sm:$0xff]  ;;  %v1604_v54 = vpack.c.bf16 %v57_v49, %v56_v48  ;;  %v1592_v55 = vpack.c.bf16 %v51_v51, %v50_v50  ;;  %v35_v56 = vld [vmem:[%s2450_s3 + $0x78] sm:$0xff]  ;;  %vm376_vm0 = vcmask 1040384   ;;  %s1877_s15 = smov [#allocation2]  }
  0x18   :  { %1601 = vmatprep.subr.bf16.mxu1 %v1600_v47  ;;  %v58_v57 = vld [vmem:[%s2450_s3 + $0x130] sm:$0xff]  ;;  %v59_v58 = vld [vmem:[%s2450_s3 + $0x138] sm:$0xff]  ;;  %v68_v59 = vld [vmem:[%s2450_s3 + $0x180] sm:$0xff]  ;;  %v1594_v61 = vpack.c.bf16 %v35_v56, %v34_v53  ;;  %vm897_vm1 = vcmask 261120   ;;  %s1086_s16 = sshll.u32 %s1877_s15, 4  ;;  %s1087_s16 = int_to_ptr.vmem [resolvable:$true] %s1086_s16 }
  0x19   :  { %1587 = vmatpush3.bf16.msra.mxu0 %v1586_v40  ;;  %v69_v60 = vld [vmem:[%s2450_s3 + $0x188] sm:$0xff]  ;;  %v1608_v62 = vpack.c.bf16 %v59_v58, %v58_v57  ;;  %v70_v0 = vld [vmem:[%s2450_s3 + $0x190] sm:$0xff]  ;;  %v71_v1 = vld [vmem:[%s2450_s3 + $0x198] sm:$0xff]  ;;  %s1853_s17 = scalar_lea.vmem %s1087_s16, 32  ;;  %p1858_p1 = scmp.lt.s32.totalorder %s1087_s16, %s1087_s16 }
  0x1a   :  { %1589 = vmatprep.subr.bf16.mxu0 %v1588_v45  ;;  %v1628_v63 = vpack.c.bf16 %v69_v60, %v68_v59  ;;  %v165_v2 = vld [vmem:[%s2447_s0] sm:$0xff]  ;;  %v168_v3 = vld [vmem:[%s2447_s0 + $0x18] sm:$0xff]  ;;  %v1632_v4 = vpack.c.bf16 %v71_v1, %v70_v0  ;;  %v73_v6 = vld [vmem:[%s2450_s3 + $0x1a8] sm:$0xff]  ;;  %v173_v45 = vlaneseq  ;;  %p1854_p0 = scmp.ne.s32.totalorder %s1087_s16, %s1853_s17  ;;  %p1859_p2 = scmp.lt.s32.totalorder %s1853_s17, %s1853_s17 }
  0x1b   :  { %1603 = vmatpush3.bf16.msra.mxu1 %v1600_v47  ;;  %v72_v5 = vld [vmem:[%s2450_s3 + $0x1a0] sm:$0xff]  ;;  %v167_v7 = vld [vmem:[%s2447_s0 + $0x10] sm:$0xff]  ;;  %v170_v8 = vld [vmem:[%s2447_s0 + $0x28] sm:$0xff] }
  0x1c   :  { %1605 = vmatprep.subr.bf16.mxu1 %v1604_v54  ;;  %v1636_v9 = vpack.c.bf16 %v73_v6, %v72_v5  ;;  %v74_v10 = vld [vmem:[%s2450_s3 + $0x1b0] sm:$0xff]  ;;  %v75_v11 = vld [vmem:[%s2450_s3 + $0x1b8] sm:$0xff]  ;;  %v169_v12 = vld [vmem:[%s2447_s0 + $0x20] sm:$0xff]  ;;  %v2136_v46 = vshrl.u32 %v173_v45, 7  ;;  %p1860_p3 = por %p1859_p2, %p1858_p1 }
  0x1d   :  { %1591 = vmatpush3.bf16.msra.mxu0 %v1590_v52  ;;  %v172_v13 = vld [vmem:[%s2447_s0 + $0x38] sm:$0xff]  ;;  %v1640_v14 = vpack.c.bf16 %v75_v11, %v74_v10  ;;  %v76_v15 = vld [vmem:[%s2450_s3 + $0x1c0] sm:$0xff]  ;;  %v77_v16 = vld [vmem:[%s2450_s3 + $0x1c8] sm:$0xff] }
  0x1e   :  { %1593 = vmatprep.subr.bf16.mxu0 %v1592_v55  ;;  %v171_v17 = vld [vmem:[%s2447_s0 + $0x30] sm:$0xff]  ;;  %v1644_v18 = vpack.c.bf16 %v77_v16, %v76_v15  ;;  %v379_v19 = vld [vmem:[%s2448_s1] sm:$0xff]  ;;  %v79_v21 = vld [vmem:[%s2450_s3 + $0x1d8] sm:$0xff]  ;;  %v175_v47 = vsub.s32 0, %v2136_v46  ;;  %p1861_p4 = pnand %p1860_p3, %p1854_p0 }
  0x1f   :  { %1607 = vmatpush3.bf16.msra.mxu1 %v1604_v54  ;;  %v78_v20 = vld [vmem:[%s2450_s3 + $0x1d0] sm:$0xff]  ;;  %v80_v23 = vld [vmem:[%s2450_s3 + $0x1e0] sm:$0xff]  ;;  %v81_v24 = vld [vmem:[%s2450_s3 + $0x1e8] sm:$0xff] }
  0x20   :  { %1609 = vmatprep.subr.bf16.mxu1 %v1608_v62  ;;  %v1648_v22 = vpack.c.bf16 %v79_v21, %v78_v20  ;;  %v1652_v25 = vpack.c.bf16 %v81_v24, %v80_v23  ;;  %v82_v26 = vld [vmem:[%s2450_s3 + $0x1f0] sm:$0xff]  ;;  %v83_v27 = vld [vmem:[%s2450_s3 + $0x1f8] sm:$0xff]  ;;  %v380_v29 = vld [vmem:[%s2448_s1 + $0x8] sm:$0xff]  ;;  %v383_v20 = vsub.s32 2, %v2136_v46 }
  0x21   :  { %1595 = vmatpush3.bf16.msra.mxu0 %v1594_v61  ;;  %v1656_v28 = vpack.c.bf16 %v83_v27, %v82_v26  ;;  %v60_v30 = vld [vmem:[%s2450_s3 + $0x140] sm:$0xff]  ;;  %v61_v31 = vld [vmem:[%s2450_s3 + $0x148] sm:$0xff]  ;;  %v62_v33 = vld [vmem:[%s2450_s3 + $0x150] sm:$0xff] }
  0x22   :  { %1629 = vmatprep.subr.bf16.mxu0 %v1628_v63  ;;  %v1612_v32 = vpack.c.bf16 %v61_v31, %v60_v30  ;;  %v63_v34 = vld [vmem:[%s2450_s3 + $0x158] sm:$0xff]  ;;  %v64_v36 = vld [vmem:[%s2450_s3 + $0x160] sm:$0xff]  ;;  %v65_v37 = vld [vmem:[%s2450_s3 + $0x168] sm:$0xff] }
  0x23   :  { %1611 = vmatpush3.bf16.msra.mxu1 %v1608_v62  ;;  %v1616_v35 = vpack.c.bf16 %v63_v34, %v62_v33  ;;  %v1620_v38 = vpack.c.bf16 %v65_v37, %v64_v36  ;;  %v66_v39 = vld [vmem:[%s2450_s3 + $0x170] sm:$0xff]  ;;  %v67_v40 = vld [vmem:[%s2450_s3 + $0x178] sm:$0xff]  ;;  %v84_v42 = vld [vmem:[%s2450_s3 + $0x200] sm:$0xff] }
  0x24   :  { %242 = vmatmul.mubr.f32.vlgmr.msra.gmra.mrb[0].mxu0 %v165_v2  ;;  %1613 = vmatprep.subr.bf16.mxu1 %v1612_v32  ;;  %v1624_v41 = vpack.c.bf16 %v67_v40, %v66_v39  ;;  %v85_v43 = vld [vmem:[%s2450_s3 + $0x208] sm:$0xff]  ;;  %v2142_v48 = vld [vmem:[%s2450_s3 + $0x480] sm:$0xff]  ;;  %v86_v58 = vld [vmem:[%s2450_s3 + $0x210] sm:$0xff] }
  0x25   :  { %1631 = vmatpush3.bf16.msra.mxu0 %v1628_v63  ;;  %246 = vmatprep.mubr.f32.mxu0 %v168_v3  ;;  %v1660_v44 = vpack.c.bf16 %v85_v43, %v84_v42  ;;  %v176_v50 = vrot.slane %v2142_v48, %v175_v47  ;;  %v87_v59 = vld [vmem:[%s2450_s3 + $0x218] sm:$0xff]  ;;  %v88_v2 = vld [vmem:[%s2450_s3 + $0x220] sm:$0xff]  ;;  %v89_v3 = vld [vmem:[%s2450_s3 + $0x228] sm:$0xff]  ;;  %v384_v24 = vrot.slane %v2142_v48, %v383_v20 }
  0x26   :  { %1633 = vmatprep.subr.bf16.mxu0 %v1632_v4  ;;  %v1664_v1 = vpack.c.bf16 %v87_v59, %v86_v58  ;;  %v90_v10 = vld [vmem:[%s2450_s3 + $0x230] sm:$0xff]  ;;  %v91_v11 = vld [vmem:[%s2450_s3 + $0x238] sm:$0xff]  ;;  %v92_v15 = vld [vmem:[%s2450_s3 + $0x240] sm:$0xff] }
  0x27   :  { %1615 = vmatpush3.bf16.msra.mxu1 %v1612_v32  ;;  %v93_v16 = vld [vmem:[%s2450_s3 + $0x248] sm:$0xff]  ;;  %v98_v26 = vld [vmem:[%s2450_s3 + $0x270] sm:$0xff]  ;;  %v99_v27 = vld [vmem:[%s2450_s3 + $0x278] sm:$0xff] }
  0x28   :  { %247 = vmatmul.mubr.f32.gmra.mrb[2].mxu0 %v167_v7  ;;  %1617 = vmatprep.subr.bf16.mxu1 %v1616_v35  ;;  %v97_v23 = vld [vmem:[%s2450_s3 + $0x268] sm:$0xff]  ;;  %v1688_v32 = vpack.c.bf16 %v99_v27, %v98_v26  ;;  %v116_v34 = vld [vmem:[%s2450_s3 + $0x300] sm:$0xff] }
  0x29   :  { %1635 = vmatpush3.bf16.msra.mxu0 %v1632_v4  ;;  %251 = vmatprep.mubr.f32.mxu0 %v170_v8  ;;  %v120_v59 = vld [vmem:[%s2450_s3 + $0x320] sm:$0xff]  ;;  %v105_v20 = vld [vmem:[%s2450_s3 + $0x2a8] sm:$0xff] }
  0x2a   :  { %1637 = vmatprep.subr.bf16.mxu0 %v1636_v9  ;;  %v109_v26 = vld [vmem:[%s2450_s3 + $0x2c8] sm:$0xff] }
  0x2b   :  { %1619 = vmatpush3.bf16.msra.mxu1 %v1616_v35  ;;  %v117_v35 = vld [vmem:[%s2450_s3 + $0x308] sm:$0xff] }
  0x2c   :  { %252 = vmatmul.mubr.f32.gmra.mrb[4].mxu0 %v169_v12  ;;  %1621 = vmatprep.subr.bf16.mxu1 %v1620_v38  ;;  %v1724_v39 = vpack.c.bf16 %v117_v35, %v116_v34  ;;  %v114_v34 = vld [vmem:[%s2450_s3 + $0x2f0] sm:$0xff]  ;;  %v115_v35 = vld [vmem:[%s2450_s3 + $0x2f8] sm:$0xff] }
  0x2d   :  { %1639 = vmatpush3.bf16.msra.mxu0 %v1636_v9  ;;  %256 = vmatprep.mubr.f32.mxu0 %v172_v13  ;;  %v1668_v9 = vpack.c.bf16 %v89_v3, %v88_v2  ;;  %v125_v2 = vld [vmem:[%s2450_s3 + $0x348] sm:$0xff] }
  0x2e   :  { %1641 = vmatprep.subr.bf16.mxu0 %v1640_v14 }
  0x2f   :  { %1623 = vmatpush3.bf16.msra.mxu1 %v1620_v38 }
  0x30   :  { %257 = vmatmul.mubr.f32.gmra.mrb[6].mxu0 %v171_v17  ;;  %1625 = vmatprep.subr.bf16.mxu1 %v1624_v41  ;;  %v1676_v17 = vpack.c.bf16 %v93_v16, %v92_v15  ;;  %v102_v16 = vld [vmem:[%s2450_s3 + $0x290] sm:$0xff] }
  0x31   :  { %1643 = vmatpush3.bf16.msra.mxu0 %v1640_v14  ;;  %1358 = vmatprep.mubr.f32.mxu0 %v379_v19  ;;  %v1672_v14 = vpack.c.bf16 %v91_v11, %v90_v10  ;;  %v95_v19 = vld [vmem:[%s2450_s3 + $0x258] sm:$0xff]  ;;  %v130_v10 = vld [vmem:[%s2450_s3 + $0x370] sm:$0xff] }
  0x32   :  { %1645 = vmatprep.subr.bf16.mxu0 %v1644_v18  ;;  %v131_v11 = vld [vmem:[%s2450_s3 + $0x378] sm:$0xff] }
  0x33   :  { %1627 = vmatpush3.bf16.msra.mxu1 %v1624_v41 }
  0x34   :  { %1661 = vmatprep.subr.bf16.mxu1 %v1660_v44 }
  0x35   :  { %1647 = vmatpush3.bf16.msra.mxu0 %v1644_v18  ;;  %v94_v18 = vld [vmem:[%s2450_s3 + $0x250] sm:$0xff] }
  0x36   :  { %1649 = vmatprep.subr.bf16.mxu0 %v1648_v22  ;;  %v1680_v21 = vpack.c.bf16 %v95_v19, %v94_v18  ;;  %v104_v19 = vld [vmem:[%s2450_s3 + $0x2a0] sm:$0xff] }
  0x39   :  { %1651 = vmatpush3.bf16.msra.mxu0 %v1648_v22  ;;  %v96_v22 = vld [vmem:[%s2450_s3 + $0x260] sm:$0xff] }
  0x3a   :  { %1653 = vmatprep.subr.bf16.mxu0 %v1652_v25 }
  0x3d   :  { %1655 = vmatpush3.bf16.msra.mxu0 %v1652_v25  ;;  %v1684_v25 = vpack.c.bf16 %v97_v23, %v96_v22  ;;  %v106_v22 = vld [vmem:[%s2450_s3 + $0x2b0] sm:$0xff]  ;;  %v107_v23 = vld [vmem:[%s2450_s3 + $0x2b8] sm:$0xff] }
  0x3e   :  { %1657 = vmatprep.subr.bf16.mxu0 %v1656_v28 }
  0x41   :  { %1659 = vmatpush3.bf16.msra.mxu0 %v1656_v28 }
  0x44   :  { %1359 = vmatmul.mubr.f32.vlgmr.msra.gmra.mrb[8].mxu0 %v380_v29 }
  0xf7   :  { %v1132_v49 = vpop.f32.mrb[0].mxu0 }
  0xf8   :  { %v1133_v51 = vpop.f32.mrb[1].mxu0 }
  0xf9   :  { %v1134_v52 = vadd.f32 %v1133_v51, %v1132_v49 }
  0xfb   :  { %v1135_v53 = vpop.f32.mrb[2].mxu0  ;;  %v244_v54 = vadd.f32 %v1134_v52, %v176_v50 }
  0xfc   :  { %v1136_v55 = vpop.f32.mrb[3].mxu0 }
  0xfd   :  { %v262_v56 = vmax.f32 %v244_v54, 0.0  ;;  %v1137_v57 = vadd.f32 %v1136_v55, %v1135_v53  ;;  %v118_v54 = vld [vmem:[%s2450_s3 + $0x310] sm:$0xff]  ;;  %v119_v55 = vld [vmem:[%s2450_s3 + $0x318] sm:$0xff] }
  0xfe   :  { %v1728_v58 = vpack.c.bf16 %v119_v55, %v118_v54 }
  0xff   :  { %1320 = vmatprep.mubr.f32.mxu1 %v262_v56  ;;  %v249_v60 = vadd.f32 %v1137_v57, %v176_v50  ;;  %v1138_v61 = vpop.f32.mrb[4].mxu0 }
 0x100   :  { %v1139_v62 = vpop.f32.mrb[5].mxu0 }
 0x101   :  { %v263_v63 = vmax.f32 %v249_v60, 0.0  ;;  %v1140_v0 = vadd.f32 %v1139_v62, %v1138_v61  ;;  %v121_v60 = vld [vmem:[%s2450_s3 + $0x328] sm:$0xff]  ;;  %v122_v62 = vld [vmem:[%s2450_s3 + $0x330] sm:$0xff] }
 0x102   :  { %v1732_v61 = vpack.c.bf16 %v121_v60, %v120_v59 }
 0x103   :  { %v254_v4 = vadd.f32 %v1140_v0, %v176_v50  ;;  %v1141_v5 = vpop.f32.mrb[6].mxu0  ;;  %1321 = vmatmul.mubr.f32.vlgmr.msra.gmra.mrb[0].mxu1 %v263_v63  ;;  %v123_v63 = vld [vmem:[%s2450_s3 + $0x338] sm:$0xff] }
 0x104   :  { %v1142_v6 = vpop.f32.mrb[7].mxu0  ;;  %1663 = vmatpush3.bf16.msra.mxu1 %v1660_v44  ;;  %v1736_v0 = vpack.c.bf16 %v123_v63, %v122_v62 }
 0x105   :  { %v264_v7 = vmax.f32 %v254_v4, 0.0  ;;  %v1143_v8 = vadd.f32 %v1142_v6, %v1141_v5  ;;  %1665 = vmatprep.subr.bf16.mxu1 %v1664_v1  ;;  %v126_v4 = vld [vmem:[%s2450_s3 + $0x350] sm:$0xff]  ;;  %v127_v5 = vld [vmem:[%s2450_s3 + $0x358] sm:$0xff] }
 0x106   :  { %v1744_v6 = vpack.c.bf16 %v127_v5, %v126_v4 }
 0x107   :  { %v259_v12 = vadd.f32 %v1143_v8, %v176_v50  ;;  %1323 = vmatprep.mubr.f32.mxu1 %v264_v7  ;;  %v128_v7 = vld [vmem:[%s2450_s3 + $0x360] sm:$0xff]  ;;  %v129_v8 = vld [vmem:[%s2450_s3 + $0x368] sm:$0xff] }
 0x108   :  { %1667 = vmatpush3.bf16.msra.mxu1 %v1664_v1  ;;  %v124_v1 = vld [vmem:[%s2450_s3 + $0x340] sm:$0xff] }
 0x109   :  { %v265_v13 = vmax.f32 %v259_v12, 0.0  ;;  %1669 = vmatprep.subr.bf16.mxu1 %v1668_v9  ;;  %v1740_v3 = vpack.c.bf16 %v125_v2, %v124_v1  ;;  %v1752_v12 = vpack.c.bf16 %v131_v11, %v130_v10 }
 0x10b   :  { %1324 = vmatmul.mubr.f32.gmra.mrb[2].mxu1 %v265_v13  ;;  %v100_v13 = vld [vmem:[%s2450_s3 + $0x280] sm:$0xff] }
 0x10c   :  { %1671 = vmatpush3.bf16.msra.mxu1 %v1668_v9  ;;  %v1748_v9 = vpack.c.bf16 %v129_v8, %v128_v7 }
 0x10d   :  { %1673 = vmatprep.subr.bf16.mxu1 %v1672_v14 }
 0x110   :  { %1675 = vmatpush3.bf16.msra.mxu1 %v1672_v14  ;;  %v101_v14 = vld [vmem:[%s2450_s3 + $0x288] sm:$0xff] }
 0x111   :  { %1677 = vmatprep.subr.bf16.mxu1 %v1676_v17  ;;  %v1692_v15 = vpack.c.bf16 %v101_v14, %v100_v13 }
 0x113   :  { %1693 = vmatprep.subr.bf16.mxu0 %v1692_v15 }
 0x114   :  { %1679 = vmatpush3.bf16.msra.mxu1 %v1676_v17  ;;  %1695 = vmatpush3.bf16.msra.mxu0 %v1692_v15  ;;  %v103_v17 = vld [vmem:[%s2450_s3 + $0x298] sm:$0xff] }
 0x115   :  { %1681 = vmatprep.subr.bf16.mxu1 %v1680_v21  ;;  %v1696_v18 = vpack.c.bf16 %v103_v17, %v102_v16 }
 0x117   :  { %v1360_v28 = vpop.f32.mrb[8].mxu0  ;;  %1697 = vmatprep.subr.bf16.mxu0 %v1696_v18 }
 0x118   :  { %v457_v29 = vadd.f32 %v1360_v28, %v384_v24  ;;  %v451_v30 = vpop.f32.mrb[9].mxu0  ;;  %1683 = vmatpush3.bf16.msra.mxu1 %v1680_v21  ;;  %1699 = vmatpush3.bf16.msra.mxu0 %v1696_v18  ;;  %v1700_v21 = vpack.c.bf16 %v105_v20, %v104_v19  ;;  %v110_v28 = vld [vmem:[%s2450_s3 + $0x2d0] sm:$0xff] }
 0x119   :  { %v452_v31 = vadd.f32 %v451_v30, %v384_v24  ;;  %1685 = vmatprep.subr.bf16.mxu1 %v1684_v25  ;;  %v1704_v24 = vpack.c.bf16 %v107_v23, %v106_v22 }
 0x11a   :  { %v461_v33 = vmul.f32 %v457_v29, %v457_v29  ;;  %1701 = vmatprep.subr.bf16.mxu0 %v1700_v21 }
 0x11b   :  { %v460_v36 = vmul.f32 %v452_v31, %v452_v31 }
 0x11c   :  { %v463_v37 = vmul.f32 %v461_v33, %v457_v29  ;;  %1687 = vmatpush3.bf16.msra.mxu1 %v1684_v25  ;;  %1703 = vmatpush3.bf16.msra.mxu0 %v1700_v21  ;;  %v108_v25 = vld [vmem:[%s2450_s3 + $0x2c0] sm:$0xff] }
 0x11d   :  { %v462_v38 = vmul.f32 %v460_v36, %v452_v31  ;;  %1689 = vmatprep.subr.bf16.mxu1 %v1688_v32  ;;  %1705 = vmatprep.subr.bf16.mxu0 %v1704_v24  ;;  %v1708_v27 = vpack.c.bf16 %v109_v26, %v108_v25  ;;  %v1720_v36 = vpack.c.bf16 %v115_v35, %v114_v34  ;;  %v136_v34 = vld [vmem:[%s2450_s3 + $0x3a0] sm:$0xff]  ;;  %v137_v35 = vld [vmem:[%s2450_s3 + $0x3a8] sm:$0xff] }
 0x11e   :  { %v465_v40 = vmul.f32 0.044715, %v463_v37  ;;  %v132_v37 = vld [vmem:[%s2450_s3 + $0x380] sm:$0xff] }
 0x11f   :  { %v464_v41 = vmul.f32 0.044715, %v462_v38  ;;  %v133_v38 = vld [vmem:[%s2450_s3 + $0x388] sm:$0xff] }
 0x120   :  { %v467_v42 = vadd.f32 %v465_v40, %v457_v29  ;;  %1691 = vmatpush3.bf16.msra.mxu1 %v1688_v32  ;;  %1707 = vmatpush3.bf16.msra.mxu0 %v1704_v24  ;;  %v113_v32 = vld [vmem:[%s2450_s3 + $0x2e8] sm:$0xff]  ;;  %v268_v40 = vsub.s32 1, %v2136_v46 }
 0x121   :  { %v466_v43 = vadd.f32 %v464_v41, %v452_v31  ;;  %1725 = vmatprep.subr.bf16.mxu1 %v1724_v39  ;;  %1709 = vmatprep.subr.bf16.mxu0 %v1708_v27 }
 0x122   :  { %v469_v44 = vmul.f32 0.7978846, %v467_v42  ;;  %v269_v41 = vrot.slane %v2142_v48, %v268_v40 }
 0x123   :  { %v468_v45 = vmul.f32 0.7978846, %v466_v43 }
 0x124   :  { %1837 = vtanh.f32 %v469_v44  ;;  %1711 = vmatpush3.bf16.msra.mxu0 %v1708_v27 }
 0x125   :  { %1839 = vtanh.f32 %v468_v45 }
 0x12e   :  { %v1838_v47 = vpop.eup %1837 }
 0x12f   :  { %v1840_v49 = vpop.eup %1839  ;;  %v473_v50 = vadd.f32 1.0, %v1838_v47 }
 0x130   :  { %v472_v51 = vadd.f32 1.0, %v1840_v49 }
 0x131   :  { %v475_v52 = vmul.f32 0.5, %v473_v50 }
 0x132   :  { %v474_v53 = vmul.f32 0.5, %v472_v51 }
 0x133   :  { %v477_v57 = vmul.f32 %v475_v52, %v457_v29  ;;  %v111_v29 = vld [vmem:[%s2450_s3 + $0x2d8] sm:$0xff] }
 0x134   :  { %v476_v56 = vmul.f32 %v474_v53, %v452_v31  ;;  %v1712_v30 = vpack.c.bf16 %v111_v29, %v110_v28  ;;  %v112_v31 = vld [vmem:[%s2450_s3 + $0x2e0] sm:$0xff]  ;;  %v134_v29 = vld [vmem:[%s2450_s3 + $0x390] sm:$0xff] }
 0x135   :  { %v1716_v33 = vpack.c.bf16 %v113_v32, %v112_v31 }
 0x136   :  { %1393 = vmatprep.mubr.f32.mxu1 %v476_v56  ;;  %1713 = vmatprep.subr.bf16.mxu0 %v1712_v30 }
 0x137   :  { %1394 = vmatmul.mubr.f32.vlgmr.msra.gmra.mrb[4].mxu1 %v477_v57  ;;  %1715 = vmatpush3.bf16.msra.mxu0 %v1712_v30  ;;  %v135_v30 = vld [vmem:[%s2450_s3 + $0x398] sm:$0xff] }
 0x138   :  { %1727 = vmatpush3.bf16.msra.mxu1 %v1724_v39  ;;  %1717 = vmatprep.subr.bf16.mxu0 %v1716_v33  ;;  %v2291_v39 = vpack.c.bf16 %v133_v38, %v132_v37  ;;  %v138_v37 = vld [vmem:[%s2450_s3 + $0x3b0] sm:$0xff]  ;;  %v139_v38 = vld [vmem:[%s2450_s3 + $0x3b8] sm:$0xff] }
 0x139   :  { %1729 = vmatprep.subr.bf16.mxu1 %v1728_v58  ;;  %v1768_v40 = vpack.c.bf16 %v139_v38, %v138_v37  ;;  %v154_v37 = vld [vmem:[%s2450_s3 + $0x430] sm:$0xff]  ;;  %v155_v38 = vld [vmem:[%s2450_s3 + $0x438] sm:$0xff] }
 0x13b   :  { %1719 = vmatpush3.bf16.msra.mxu0 %v1716_v33  ;;  %v1760_v33 = vpack.c.bf16 %v135_v30, %v134_v29 }
 0x13c   :  { %1731 = vmatpush3.bf16.msra.mxu1 %v1728_v58  ;;  %1721 = vmatprep.subr.bf16.mxu0 %v1720_v36 }
 0x13d   :  { %1733 = vmatprep.subr.bf16.mxu1 %v1732_v61 }
 0x13f   :  { %1723 = vmatpush3.bf16.msra.mxu0 %v1720_v36  ;;  %v1764_v36 = vpack.c.bf16 %v137_v35, %v136_v34  ;;  %v152_v34 = vld [vmem:[%s2450_s3 + $0x420] sm:$0xff]  ;;  %v153_v35 = vld [vmem:[%s2450_s3 + $0x428] sm:$0xff] }
 0x140   :  { %1735 = vmatpush3.bf16.msra.mxu1 %v1732_v61  ;;  %1757 = vmatprep.subr.bf16.mxu0 %v2291_v39 }
 0x141   :  { %1737 = vmatprep.subr.bf16.mxu1 %v1736_v0 }
 0x144   :  { %1739 = vmatpush3.bf16.msra.mxu1 %v1736_v0 }
 0x145   :  { %1741 = vmatprep.subr.bf16.mxu1 %v1740_v3 }
 0x148   :  { %1743 = vmatpush3.bf16.msra.mxu1 %v1740_v3 }
 0x149   :  { %1745 = vmatprep.subr.bf16.mxu1 %v1744_v6 }
 0x14c   :  { %1747 = vmatpush3.bf16.msra.mxu1 %v1744_v6 }
 0x14d   :  { %1749 = vmatprep.subr.bf16.mxu1 %v1748_v9 }
 0x150   :  { %1751 = vmatpush3.bf16.msra.mxu1 %v1748_v9  ;;  %v480_v9 = vsub.s32 3, %v2136_v46 }
 0x151   :  { %1753 = vmatprep.subr.bf16.mxu1 %v1752_v12 }
 0x152   :  { %v481_v10 = vrot.slane %v2142_v48, %v480_v9 }
 0x154   :  { %1755 = vmatpush3.bf16.msra.mxu1 %v1752_v12 }
 0x1d6   :  { %v1322_v42 = vpop.f32.mrb[0].mxu1 }
 0x1d7   :  { %v342_v43 = vadd.f32 %v1322_v42, %v269_v41  ;;  %v336_v44 = vpop.f32.mrb[1].mxu1 }
 0x1d8   :  { %v337_v45 = vadd.f32 %v336_v44, %v269_v41  ;;  %v143_v44 = vld [vmem:[%s2450_s3 + $0x3d8] sm:$0xff] }
 0x1d9   :  { %v2296_v47 = vmax.f32 %v342_v43, 0.0  ;;  %v142_v43 = vld [vmem:[%s2450_s3 + $0x3d0] sm:$0xff] }
 0x1da   :  { %v2298_v49 = vmax.f32 %v337_v45, 0.0  ;;  %v1776_v45 = vpack.c.bf16 %v143_v44, %v142_v43  ;;  %v158_v43 = vld [vmem:[%s2450_s3 + $0x450] sm:$0xff]  ;;  %v159_v44 = vld [vmem:[%s2450_s3 + $0x458] sm:$0xff] }
 0x1dc   :  { %v359_v50 = vadd.f32 %v2296_v47, %v2298_v49  ;;  %1463 = vmatprep.mubr.f32.mxu1 %v2298_v49 }
 0x1dd   :  { %1464 = vmatmul.mubr.f32.vlgmr.msra.gmra.mrb[6].mxu1 %v2296_v47 }
 0x1de   :  { %v360_v51 = vrot.slane %v359_v50, 4  ;;  %v1325_v52 = vpop.f32.mrb[2].mxu1 }
 0x1df   :  { %v352_v53 = vadd.f32 %v1325_v52, %v269_v41  ;;  %v346_v54 = vpop.f32.mrb[3].mxu1  ;;  %v146_v52 = vld [vmem:[%s2450_s3 + $0x3f0] sm:$0xff] }
 0x1e0   :  { %v361_v55 = vadd.f32 %v360_v51, %v359_v50  ;;  %v347_v56 = vadd.f32 %v346_v54, %v269_v41  ;;  %v140_v41 = vld [vmem:[%s2450_s3 + $0x3c0] sm:$0xff]  ;;  %v145_v50 = vld [vmem:[%s2450_s3 + $0x3e8] sm:$0xff] }
 0x1e1   :  { %v2304_v57 = vmax.f32 %v352_v53, 0.0  ;;  %v147_v53 = vld [vmem:[%s2450_s3 + $0x3f8] sm:$0xff] }
 0x1e2   :  { %v362_v58 = vrot.slane %v361_v55, 2  ;;  %v2306_v59 = vmax.f32 %v347_v56, 0.0  ;;  %v1784_v54 = vpack.c.bf16 %v147_v53, %v146_v52  ;;  %v162_v52 = vld [vmem:[%s2450_s3 + $0x470] sm:$0xff]  ;;  %v163_v53 = vld [vmem:[%s2450_s3 + $0x478] sm:$0xff] }
 0x1e4   :  { %v368_v60 = vadd.f32 %v2304_v57, %v2306_v59  ;;  %1466 = vmatprep.mubr.f32.mxu1 %v2306_v59  ;;  %v363_v61 = vadd.f32 %v362_v58, %v361_v55 }
 0x1e5   :  { %1467 = vmatmul.mubr.f32.gmra.mrb[8].mxu1 %v2304_v57 }
 0x1e6   :  { %v369_v62 = vrot.slane %v368_v60, 4  ;;  %v364_v0 = vrot.slane %v363_v61, 1 }
 0x1e8   :  { %v370_v63 = vadd.f32 %v369_v62, %v368_v60  ;;  %v365_v2 = vadd.f32 %v364_v0, %v363_v61 }
 0x1ea   :  { %v371_v1 = vrot.slane %v370_v63, 2  ;;  %v367_v5 = vmul.f32 0.0625, %v365_v2 }
 0x1ec   :  { %v372_v3 = vadd.f32 %v371_v1, %v370_v63 }
 0x1ee   :  { %v373_v4 = vrot.slane %v372_v3, 1 }
 0x1f0   :  { %v374_v6 = vadd.f32 %v373_v4, %v372_v3  ;;  %v820_v4 = vld [vmem:[%s2449_s2] sm:$0xff] }
 0x1f2   :  { %v375_v7 = vmul.f32 0.0625, %v374_v6  ;;  %v821_v6 = vld [vmem:[%s2449_s2 + $0x8] sm:$0xff] }
 0x1f4   :  { %v377_v8 = vsel %vm376_vm0, %v367_v5, %v375_v7 }
 0x1f5   :  { %378 = vst [vmem:[#allocation2] sm:$0x3] %v377_v8 }
 0x20a   :  { %v1395_v11 = vpop.f32.mrb[4].mxu1 }
 0x20b   :  { %v554_v12 = vadd.f32 %v1395_v11, %v481_v10  ;;  %v548_v13 = vpop.f32.mrb[5].mxu1 }
 0x20c   :  { %v549_v14 = vadd.f32 %v548_v13, %v481_v10 }
 0x20d   :  { %v558_v15 = vmul.f32 %v554_v12, %v554_v12 }
 0x20e   :  { %v557_v16 = vmul.f32 %v549_v14, %v549_v14 }
 0x20f   :  { %v560_v17 = vmul.f32 %v558_v15, %v554_v12 }
 0x210   :  { %v559_v18 = vmul.f32 %v557_v16, %v549_v14 }
 0x211   :  { %v562_v19 = vmul.f32 0.044715, %v560_v17 }
 0x212   :  { %v561_v20 = vmul.f32 0.044715, %v559_v18 }
 0x213   :  { %v564_v21 = vadd.f32 %v562_v19, %v554_v12 }
 0x214   :  { %v563_v22 = vadd.f32 %v561_v20, %v549_v14 }
 0x215   :  { %v566_v23 = vmul.f32 0.7978846, %v564_v21 }
 0x216   :  { %v565_v24 = vmul.f32 0.7978846, %v563_v22  ;;  %v148_v22 = vld [vmem:[%s2450_s3 + $0x400] sm:$0xff] }
 0x217   :  { %1841 = vtanh.f32 %v566_v23  ;;  %v149_v23 = vld [vmem:[%s2450_s3 + $0x408] sm:$0xff] }
 0x218   :  { %1843 = vtanh.f32 %v565_v24  ;;  %v1804_v24 = vpack.c.bf16 %v149_v23, %v148_v22 }
 0x221   :  { %v1842_v25 = vpop.eup %1841 }
 0x222   :  { %v1844_v46 = vpop.eup %1843  ;;  %v570_v26 = vadd.f32 1.0, %v1842_v25 }
 0x223   :  { %v569_v48 = vadd.f32 1.0, %v1844_v46 }
 0x224   :  { %v572_v27 = vmul.f32 0.5, %v570_v26 }
 0x225   :  { %v571_v28 = vmul.f32 0.5, %v569_v48 }
 0x226   :  { %v2322_v32 = vmul.f32 %v572_v27, %v554_v12  ;;  %v150_v27 = vld [vmem:[%s2450_s3 + $0x410] sm:$0xff] }
 0x227   :  { %v2320_v31 = vmul.f32 %v571_v28, %v549_v14  ;;  %v151_v28 = vld [vmem:[%s2450_s3 + $0x418] sm:$0xff] }
 0x229   :  { %1428 = vmatprep.mubr.f32.mxu0 %v2320_v31 }
 0x22a   :  { %1429 = vmatmul.mubr.f32.vlgmr.msra.gmra.mrb[10].mxu0 %v2322_v32 }
 0x22b   :  { %1759 = vmatpush3.bf16.msra.mxu0 %v2291_v39  ;;  %1501 = vmatprep.mubr.f32.mxu0 %v2298_v49  ;;  %v141_v39 = vld [vmem:[%s2450_s3 + $0x3c8] sm:$0xff]  ;;  %v144_v49 = vld [vmem:[%s2450_s3 + $0x3e0] sm:$0xff] }
 0x22c   :  { %1761 = vmatprep.subr.bf16.mxu0 %v1760_v33  ;;  %v1772_v42 = vpack.c.bf16 %v141_v39, %v140_v41  ;;  %v1780_v51 = vpack.c.bf16 %v145_v50, %v144_v49  ;;  %v156_v41 = vld [vmem:[%s2450_s3 + $0x440] sm:$0xff]  ;;  %v157_v39 = vld [vmem:[%s2450_s3 + $0x448] sm:$0xff] }
 0x22d   :  { %v160_v49 = vld [vmem:[%s2450_s3 + $0x460] sm:$0xff]  ;;  %v161_v50 = vld [vmem:[%s2450_s3 + $0x468] sm:$0xff] }
 0x22f   :  { %1763 = vmatpush3.bf16.msra.mxu0 %v1760_v33  ;;  %v1808_v33 = vpack.c.bf16 %v151_v28, %v150_v27 }
 0x230   :  { %1765 = vmatprep.subr.bf16.mxu0 %v1764_v36 }
 0x233   :  { %1767 = vmatpush3.bf16.msra.mxu0 %v1764_v36  ;;  %v1812_v36 = vpack.c.bf16 %v153_v35, %v152_v34 }
 0x234   :  { %1769 = vmatprep.subr.bf16.mxu0 %v1768_v40 }
 0x237   :  { %1771 = vmatpush3.bf16.msra.mxu0 %v1768_v40  ;;  %v1816_v40 = vpack.c.bf16 %v155_v38, %v154_v37 }
 0x238   :  { %1773 = vmatprep.subr.bf16.mxu0 %v1772_v42 }
 0x23b   :  { %1775 = vmatpush3.bf16.msra.mxu0 %v1772_v42  ;;  %v1820_v42 = vpack.c.bf16 %v157_v39, %v156_v41 }
 0x23c   :  { %1777 = vmatprep.subr.bf16.mxu0 %v1776_v45 }
 0x23f   :  { %1779 = vmatpush3.bf16.msra.mxu0 %v1776_v45  ;;  %v1824_v45 = vpack.c.bf16 %v159_v44, %v158_v43 }
 0x240   :  { %1781 = vmatprep.subr.bf16.mxu0 %v1780_v51 }
 0x243   :  { %1783 = vmatpush3.bf16.msra.mxu0 %v1780_v51  ;;  %v1828_v51 = vpack.c.bf16 %v161_v50, %v160_v49 }
 0x244   :  { %1785 = vmatprep.subr.bf16.mxu0 %v1784_v54 }
 0x247   :  { %1787 = vmatpush3.bf16.msra.mxu0 %v1784_v54  ;;  %v1832_v54 = vpack.c.bf16 %v163_v53, %v162_v52 }
 0x24a   :  { %1502 = vmatmul.mubr.f32.vlgmr.msra.gmra.mrb[12].mxu0 %v2296_v47 }
 0x24b   :  { %1504 = vmatprep.mubr.f32.mxu0 %v2306_v59 }
 0x24e   :  { %1505 = vmatmul.mubr.f32.gmra.mrb[14].mxu0 %v2304_v57 }
 0x2b0   :  { %v1465_v55 = vpop.f32.mrb[6].mxu1 }
 0x2b1   :  { %v716_v56 = vpop.f32.mrb[7].mxu1 }
 0x2b2   :  { %v1788_v58 = vpack.c.bf16 %v1465_v55, %v716_v56 }
 0x2b4   :  { %1789 = vmatprep.subr.bf16.mxu0 %v1788_v58 }
 0x2b5   :  { %1791 = vmatpush3.bf16.xpose.msra.mxu0 %v1788_v58 }
 0x2b8   :  { %v1468_v60 = vpop.f32.mrb[8].mxu1 }
 0x2b9   :  { %v726_v61 = vpop.f32.mrb[9].mxu1 }
 0x2ba   :  { %v1792_v62 = vpack.c.bf16 %v1468_v60, %v726_v61 }
 0x2bc   :  { %1793 = vmatprep.subr.bf16.mxu0 %v1792_v62 }
 0x2bd   :  { %1795 = vmatpush3.bf16.xpose.msra.mxu0 %v1792_v62 }
 0x2fd   :  { %v1430_v63 = vpop.f32.mrb[10].mxu0 }
 0x2fe   :  { %v641_v0 = vpop.f32.mrb[11].mxu0 }
 0x2ff   :  { %1515 = vmatprep.mubr.f32.mxu0 %v641_v0 }
 0x300   :  { %1516 = vmatmul.mubr.f32.vlgmr.msra.gmra.mrb[16].mxu0 %v1430_v63 }
 0x31d   :  { %v1503_v1 = vpop.f32.mrb[12].mxu0 }
 0x31e   :  { %v801_v47 = vpop.f32.mrb[13].mxu0 }
 0x31f   :  { %v1796_v2 = vpack.c.bf16 %v1503_v1, %v801_v47 }
 0x321   :  { %v1506_v59 = vpop.f32.mrb[14].mxu0  ;;  %1797 = vmatprep.subr.bf16.mxu1 %v1796_v2 }
 0x322   :  { %v811_v57 = vpop.f32.mrb[15].mxu0  ;;  %1799 = vmatpush3.bf16.msra.mxu1 %v1796_v2 }
 0x323   :  { %v1800_v3 = vpack.c.bf16 %v1506_v59, %v811_v57 }
 0x325   :  { %1801 = vmatprep.subr.bf16.mxu1 %v1800_v3 }
 0x326   :  { %1803 = vmatpush3.bf16.msra.mxu1 %v1800_v3 }
 0x327   :  { %1805 = vmatprep.subr.bf16.mxu1 %v1804_v24 }
 0x3d3   :  { %v1517_v5 = vpop.f32.mrb[16].mxu0 }
 0x3d4   :  { %v888_v7 = vpop.f32.mrb[17].mxu0  ;;  %v894_v9 = vadd.f32 %v1517_v5, %v821_v6 }
 0x3d5   :  { %v889_v8 = vadd.f32 %v888_v7, %v820_v4 }
 0x3d6   :  { %v901_v11 = vsel %vm897_vm1, %v894_v9, -inf }
 0x3d7   :  { %v898_v10 = vsel %vm897_vm1, %v889_v8, -inf }
 0x3d8   :  { %899 = vmax.xlane.f32.xlu0 %v898_v10 }
 0x3dc   :  { %902 = vmax.xlane.f32.xlu0 %v901_v11 }
 0x465   :  { %v900_v12 = vpop.xlane.xlu0 %899 }
 0x466   :  { %v904_v13 = vsub.f32 %v889_v8, %v900_v12 }
 0x468   :  { %v906_v14 = vmul.f32 1.442695, %v904_v13 }
 0x469   :  { %v903_v15 = vpop.xlane.xlu0 %902 }
 0x46a   :  { %1845 = vpow2.f32 %v906_v14  ;;  %v905_v16 = vsub.f32 %v894_v9, %v903_v15 }
 0x46c   :  { %v908_v17 = vmul.f32 1.442695, %v905_v16 }
 0x46e   :  { %1847 = vpow2.f32 %v908_v17 }
 0x474   :  { %v1846_v18 = vpop.eup %1845 }
 0x475   :  { %v910_v19 = vsel %vm897_vm1, %v1846_v18, 0.0 }
 0x476   :  { %911 = vadd.xlane.f32.xlu1 %v910_v19 }
 0x478   :  { %v1848_v20 = vpop.eup %1847 }
 0x479   :  { %v913_v21 = vsel %vm897_vm1, %v1848_v20, 0.0 }
 0x47a   :  { %914 = vadd.xlane.f32.xlu1 %v913_v21 }
 0x503   :  { %v912_v25 = vpop.xlane.xlu1 %911 }
 0x504   :  { %1849 = vrcp.f32 %v912_v25 }
 0x507   :  { %v915_v46 = vpop.xlane.xlu1 %914 }
 0x508   :  { %1851 = vrcp.f32 %v915_v46 }
 0x50e   :  { %v1850_v26 = vpop.eup %1849 }
 0x50f   :  { %v918_v48 = vmul.f32 %v1850_v26, %v1846_v18 }
 0x511   :  { %1526 = vmatprep.mubr.msk.f32.mxu1 %vm897_vm1, %v918_v48 }
 0x512   :  { %v1852_v29 = vpop.eup %1851 }
 0x513   :  { %v919_v30 = vmul.f32 %v1852_v29, %v1848_v20 }
 0x515   :  { %1527 = vmatmul.mubr.msk.f32.vlgmr.msra.gmra.mrb[10].mxu1 %vm897_vm1, %v919_v30 }
 0x516   :  { %1807 = vmatpush3.bf16.msra.mxu1 %v1804_v24 }
 0x517   :  { %1809 = vmatprep.subr.bf16.mxu1 %v1808_v33 }
 0x51a   :  { %1811 = vmatpush3.bf16.msra.mxu1 %v1808_v33 }
 0x51b   :  { %1813 = vmatprep.subr.bf16.mxu1 %v1812_v36 }
 0x51e   :  { %1815 = vmatpush3.bf16.msra.mxu1 %v1812_v36 }
 0x51f   :  { %1817 = vmatprep.subr.bf16.mxu1 %v1816_v40 }
 0x522   :  { %1819 = vmatpush3.bf16.msra.mxu1 %v1816_v40 }
 0x523   :  { %1821 = vmatprep.subr.bf16.mxu1 %v1820_v42 }
 0x526   :  { %1823 = vmatpush3.bf16.msra.mxu1 %v1820_v42 }
 0x527   :  { %1825 = vmatprep.subr.bf16.mxu1 %v1824_v45 }
 0x52a   :  { %1827 = vmatpush3.bf16.msra.mxu1 %v1824_v45 }
 0x52b   :  { %1829 = vmatprep.subr.bf16.mxu1 %v1828_v51 }
 0x52e   :  { %1831 = vmatpush3.bf16.msra.mxu1 %v1828_v51 }
 0x52f   :  { %1833 = vmatprep.subr.bf16.mxu1 %v1832_v54 }
 0x532   :  { %1835 = vmatpush3.bf16.msra.mxu1 %v1832_v54 }
 0x5e8   :  { %v1528_v55 = vpop.f32.mrb[10].mxu1 }
 0x5e9   :  { %v992_v56 = vpop.f32.mrb[11].mxu1 }
 0x5ea   :  { %1561 = vmatprep.mubr.f32.mxu1 %v992_v56 }
 0x5eb   :  { %1562 = vmatmul.mubr.f32.vlgmr.msra.gmra.mrb[12].mxu1 %v1528_v55 }
 0x5ec   :  { %1864 = shalt.err (!%p1861_p4)
}
 0x5ed   :  { %s1865_s19 = scalar_lea.hbm %s2451_s4, 32 }
 0x5ee   :  { %p1866_p5 = scmp.ne.s32.totalorder %s2451_s4, %s1865_s19  ;;  %p1869_p6 = scmp.lt.u32.totalorder %s1865_s19, %s2451_s4 }
 0x5f0   :  { %p1871_p7 = pnand %p1869_p6, %p1866_p5 }
 0x5f2   :  { %1874 = shalt.err (!%p1871_p7)
}
 0x5f3   :  { %1089 = dma.vmem_to_hbm [thread:$0]  %s1087_s16, 32, %s2451_s4, [#allocation3]  }
 0x6be   :  { %v1563_v58 = vpop.f32.mrb[12].mxu1 }
 0x6bf   :  { %v1077_v60 = vadd.f32 %v1563_v58, %v2322_v32  ;;  %v1067_v61 = vpop.f32.mrb[13].mxu1 }
 0x6c0   :  { %v1076_v62 = vadd.f32 %v1067_v61, %v2320_v31 }
 0x6c1   :  { %1079 = vst [vmem:[%s2452_s5 + $0x8] sm:$0xff] %v1077_v60 }
 0x6c2   :  { %1078 = vst [vmem:[%s2452_s5] sm:$0xff] %v1076_v62 }
 0x6c3   :  { %1875 = dma.done.wait [#allocation3], 32  }
 0x6c4   :  { %1876 = vsyncadd [#allocation3], 4294967264 }
 0x6c5   :  { %1097 = vsyncpa [#allocation3], 1 }

</bundles_post_ra>
